<compile_context>
chip_gen: v6e
topology: v6e:2x2x1
jax: 0.10.0
libtpu: 0.0.40
codegen_flags: <defaults>
</compile_context>

<pallas_src>
import jax
import jax.numpy as jnp
from jax.experimental import pallas as pl
from jax.experimental.pallas import tpu as pltpu


def _round_up(x, m):
    return ((x + m - 1) // m) * m


def _make_kernel(TS, HW):
    """Kernel closure over the static spatial tile size and true extent."""
    need_col_mask = (HW % TS) != 0

    def kernel(preds_ref, targets_ref, inter_ref, sums_ref):
        s = pl.program_id(1)  # spatial (reduction) axis — sequential

        @pl.when(s == 0)
        def _():
            inter_ref[...] = jnp.zeros_like(inter_ref)
            sums_ref[...] = jnp.zeros_like(sums_ref)

        p = preds_ref[...].astype(jnp.float32)    # (TR, TS)
        t = targets_ref[...].astype(jnp.float32)  # (TR, TS)

        # sigmoid(x) = 0.5 * tanh(0.5 * x) + 0.5 : single EUP transcendental,
        # no full-precision divide; stays hidden under the DMA on all chips.
        sig = 0.5 * jnp.tanh(0.5 * p) + 0.5

        prod = sig * t
        ssum = sig + t
        if need_col_mask:
            # Mask columns past the true spatial extent.  Must be a select
            # (jnp.where), not multiply-by-mask: the uninitialized VMEM tail
            # of the last partial block may contain NaN/Inf.
            col = jax.lax.broadcasted_iota(jnp.int32, prod.shape, 1) + s * TS
            valid = col < HW
            prod = jnp.where(valid, prod, 0.0)
            ssum = jnp.where(valid, ssum, 0.0)

        # Per-row (per sample-class pair) partial sums over this chunk.
        inter_ref[...] += jnp.sum(prod, axis=1, keepdims=True)  # (TR, 1)
        sums_ref[...] += jnp.sum(ssum, axis=1, keepdims=True)   # (TR, 1)

    return kernel


def _min_sublane(dtype):
    """Minimum second-to-last tile dim for this dtype (sub-32-bit packs)."""
    itemsize = jnp.dtype(dtype).itemsize
    return max(8, 32 // min(itemsize, 4))


def iou_loss(pred, target, smooth=1e-6, *, block_bytes=4 * 1024 * 1024):
    """Pallas equivalent of IoULoss.forward(pred, target, smooth)."""
    assert pred.shape == target.shape
    N, C = pred.shape[0], pred.shape[1]
    HW = 1
    for d in pred.shape[2:]:
        HW *= d
    R = N * C

    # Free metadata reshapes — no dtype change, no copy, no extra HBM traffic.
    p2 = pred.reshape(R, HW)
    t2 = target.reshape(R, HW)

    p_item = jnp.dtype(p2.dtype).itemsize
    t_item = jnp.dtype(t2.dtype).itemsize

    # --- row tile: minimize wasted rows, prefer >=2 blocks (v7x megacore),
    # --- prefer larger tiles on remaining ties ------------------------------
    min_tr = max(_min_sublane(p2.dtype), _min_sublane(t2.dtype))
    candidates = [tr for tr in (8, 16, 32, 64) if tr >= min_tr]

    def _waste(tr):
        return pl.cdiv(R, tr) * tr - R

    TR = min(candidates, key=lambda tr: (_waste(tr), pl.cdiv(R, tr) < 2, -tr))
    nrb = pl.cdiv(R, TR)

    # --- spatial tile: lane-aligned, ~block_bytes per input ------------------
    max_item = max(p_item, t_item)
    ts_target = max(128, (block_bytes // (max_item * TR)) // 128 * 128)
    TS = min(_round_up(HW, 128), ts_target)
    nsb = pl.cdiv(HW, TS)

    # --- VMEM budget: 2 inputs x 2 double-buffers x block + slack ------------
    block_in_bytes = TR * TS * (p_item + t_item)
    vmem_limit = min(40 * 1024 * 1024,
                     max(16 * 1024 * 1024,
                         2 * block_in_bytes + 4 * 1024 * 1024))

    # Keep every output block fully in-bounds (tiny array, zero HBM cost).
    R_out = nrb * TR

    out_inter, out_sums = pl.pallas_call(
        _make_kernel(TS, HW),
        out_shape=(jax.ShapeDtypeStruct((R_out, 1), jnp.float32),
                   jax.ShapeDtypeStruct((R_out, 1), jnp.float32)),
        grid_spec=pltpu.PrefetchScalarGridSpec(
            num_scalar_prefetch=0,
            grid=(nrb, nsb),
            in_specs=[
                pl.BlockSpec((TR, TS), lambda r, s: (r, s)),
                pl.BlockSpec((TR, TS), lambda r, s: (r, s)),
            ],
            out_specs=[
                pl.BlockSpec((TR, 1), lambda r, s: (r, 0)),
                pl.BlockSpec((TR, 1), lambda r, s: (r, 0)),
            ],
        ),
        compiler_params=pltpu.CompilerParams(
            dimension_semantics=("parallel", "arbitrary"),
            vmem_limit_bytes=vmem_limit),
    )(p2, t2)

    # --- tiny epilogue in plain JAX ------------------------------------------
    inter = out_inter[:R, 0].reshape(N, C)
    sums = out_sums[:R, 0].reshape(N, C)
    union = sums - inter
    iou = (inter + smooth) / (union + smooth)        # (N, C)
    mean_iou = jnp.mean(iou, axis=1)                 # mean over classes
    return 1.0 - jnp.mean(mean_iou)                  # 1 - mean over batch


def _reference(pred, target, smooth=1e-6):
    """Pure-JAX reference mirroring the PyTorch IoULoss module exactly."""
    p = jax.nn.sigmoid(pred).reshape(pred.shape[0], pred.shape[1], -1)
    t = target.reshape(target.shape[0], target.shape[1], -1)
    ious = []
    for i in range(pred.shape[1]):
        intersection = (p[:, i] * t[:, i]).sum(axis=1)
        union = (p[:, i] + t[:, i]).sum(axis=1) - intersection
        ious.append((intersection + smooth) / (union + smooth))
    mean_iou = jnp.stack(ious, axis=1).mean(axis=1)
    return 1.0 - mean_iou.mean()


if __name__ == "__main__":
    key = jax.random.PRNGKey(0)
    k1, k2, k3 = jax.random.split(key, 3)

    # 1) Main test: f32 NCHW, lane-aligned spatial extent.
    N, C, H, W = 2, 4, 16, 16
    pred = jax.random.normal(k1, (N, C, H, W), dtype=jnp.float32)
    label_ids = jax.random.randint(k2, (N, H, W), 0, C)
    target = jax.nn.one_hot(label_ids, C, axis=1, dtype=jnp.float32)

    loss = jax.block_until_ready(iou_loss(pred, target))
    ref = _reference(pred, target)
    assert jnp.allclose(loss, ref, rtol=1e-5, atol=1e-5), (loss, ref)

    # 2) Ragged shapes: exercises in-kernel tail masking (HW % 128 != 0)
    #    and partial row blocks (R % 8 != 0), with no jnp.pad anywhere.
    pred2 = jax.random.normal(k3, (2, 3, 7, 9), dtype=jnp.float32)
    target2 = (pred2 > 0).astype(jnp.float32)
    loss2 = jax.block_until_ready(iou_loss(pred2, target2))
    ref2 = _reference(pred2, target2)
    assert jnp.allclose(loss2, ref2, rtol=1e-5, atol=1e-5), (loss2, ref2)

    # 3) Native bf16 path: inputs stay bf16 in HBM (half the DMA bytes),
    #    cast to f32 in-register inside the kernel.
    pred3 = pred.astype(jnp.bfloat16)
    target3 = target.astype(jnp.bfloat16)
    loss3 = jax.block_until_ready(iou_loss(pred3, target3))
    ref3 = _reference(pred3.astype(jnp.float32), target3.astype(jnp.float32))
    assert jnp.allclose(loss3, ref3, rtol=1e-4, atol=1e-4), (loss3, ref3)

    print("KERNEL_OK")
</pallas_src>

<mosaic_0001>
module attributes {stable_mosaic.version = 11 : i64} {
  func.func @kernel(%arg0: i32, %arg1: i32, %arg2: memref<8x256xf32, #tpu.memory_space<vmem>>, %arg3: memref<8x256xf32, #tpu.memory_space<vmem>>, %arg4: memref<8x1xf32, #tpu.memory_space<vmem>>, %arg5: memref<8x1xf32, #tpu.memory_space<vmem>>) attributes {dimension_semantics = [#tpu.dimension_semantics<parallel>, #tpu.dimension_semantics<arbitrary>], iteration_bounds = array<i64: 1, 1>, scalar_prefetch = 0 : i64, scratch_operands = 0 : i64, tpu.core_type = #tpu.core_type<tc>, window_params = [{transform_indices = @transform_0, window_bounds = array<i64: 8, 256>}, {transform_indices = @transform_1, window_bounds = array<i64: 8, 256>}, {transform_indices = @transform_2, window_bounds = array<i64: 8, 1>}, {transform_indices = @transform_3, window_bounds = array<i64: 8, 1>}]} {
    %c0_i32 = arith.constant 0 : i32
    %0 = arith.cmpi eq, %arg1, %c0_i32 : i32
    %1 = arith.extui %0 : i1 to i32
    %c0_i32_0 = arith.constant 0 : i32
    %2 = arith.cmpi ne, %1, %c0_i32_0 : i32
    scf.if %2 {
      %cst_16 = arith.constant 0.000000e+00 : f32
      %24 = vector.broadcast %cst_16 : f32 to vector<8x1xf32>
      %c0_17 = arith.constant 0 : index
      %c0_18 = arith.constant 0 : index
      %25 = vector.load %arg4[%c0_17, %c0_18] : memref<8x1xf32, #tpu.memory_space<vmem>>, vector<8x1xf32>
      tpu.vector_store %arg4[%c0_17, %c0_18], %24 {strides = array<i32>} : memref<8x1xf32, #tpu.memory_space<vmem>>, vector<8x1xf32>,
      %cst_19 = arith.constant 0.000000e+00 : f32
      %26 = vector.broadcast %cst_19 : f32 to vector<8x1xf32>
      %c0_20 = arith.constant 0 : index
      %c0_21 = arith.constant 0 : index
      %27 = vector.load %arg5[%c0_20, %c0_21] : memref<8x1xf32, #tpu.memory_space<vmem>>, vector<8x1xf32>
      tpu.vector_store %arg5[%c0_20, %c0_21], %26 {strides = array<i32>} : memref<8x1xf32, #tpu.memory_space<vmem>>, vector<8x1xf32>,
    } else {
    }
    %c0 = arith.constant 0 : index
    %c0_1 = arith.constant 0 : index
    %3 = vector.load %arg2[%c0, %c0_1] : memref<8x256xf32, #tpu.memory_space<vmem>>, vector<8x256xf32>
    %c0_2 = arith.constant 0 : index
    %c0_3 = arith.constant 0 : index
    %4 = vector.load %arg3[%c0_2, %c0_3] : memref<8x256xf32, #tpu.memory_space<vmem>>, vector<8x256xf32>
    %cst = arith.constant 5.000000e-01 : f32
    %5 = vector.broadcast %cst : f32 to vector<8x256xf32>
    %6 = arith.mulf %5, %3 : vector<8x256xf32>
    %7 = math.tanh %6 : vector<8x256xf32>
    %cst_4 = arith.constant 5.000000e-01 : f32
    %8 = vector.broadcast %cst_4 : f32 to vector<8x256xf32>
    %9 = arith.mulf %8, %7 : vector<8x256xf32>
    %cst_5 = arith.constant 5.000000e-01 : f32
    %10 = vector.broadcast %cst_5 : f32 to vector<8x256xf32>
    %11 = arith.addf %9, %10 : vector<8x256xf32>
    %12 = arith.mulf %11, %4 : vector<8x256xf32>
    %13 = arith.addf %11, %4 : vector<8x256xf32>
    %c0_6 = arith.constant 0 : index
    %c0_7 = arith.constant 0 : index
    %14 = vector.load %arg4[%c0_6, %c0_7] : memref<8x1xf32, #tpu.memory_space<vmem>>, vector<8x1xf32>
    %cst_8 = arith.constant dense<0.000000e+00> : vector<8xf32>
    %15 = vector.multi_reduction <add>, %12, %cst_8 [1] : vector<8x256xf32> to vector<8xf32>
    %16 = vector.shape_cast %15 : vector<8xf32> to vector<8x1xf32>
    %17 = arith.addf %14, %16 : vector<8x1xf32>
    %c0_9 = arith.constant 0 : index
    %c0_10 = arith.constant 0 : index
    %18 = vector.load %arg4[%c0_9, %c0_10] : memref<8x1xf32, #tpu.memory_space<vmem>>, vector<8x1xf32>
    tpu.vector_store %arg4[%c0_9, %c0_10], %17 {strides = array<i32>} : memref<8x1xf32, #tpu.memory_space<vmem>>, vector<8x1xf32>,
    %c0_11 = arith.constant 0 : index
    %c0_12 = arith.constant 0 : index
    %19 = vector.load %arg5[%c0_11, %c0_12] : memref<8x1xf32, #tpu.memory_space<vmem>>, vector<8x1xf32>
    %cst_13 = arith.constant dense<0.000000e+00> : vector<8xf32>
    %20 = vector.multi_reduction <add>, %13, %cst_13 [1] : vector<8x256xf32> to vector<8xf32>
    %21 = vector.shape_cast %20 : vector<8xf32> to vector<8x1xf32>
    %22 = arith.addf %19, %21 : vector<8x1xf32>
    %c0_14 = arith.constant 0 : index
    %c0_15 = arith.constant 0 : index
    %23 = vector.load %arg5[%c0_14, %c0_15] : memref<8x1xf32, #tpu.memory_space<vmem>>, vector<8x1xf32>
    tpu.vector_store %arg5[%c0_14, %c0_15], %22 {strides = array<i32>} : memref<8x1xf32, #tpu.memory_space<vmem>>, vector<8x1xf32>,
    return
  }
  func.func @transform_0(%arg0: i32, %arg1: i32) -> (i32, i32) {
    %c0_i32 = arith.constant 0 : i32
    return %arg0, %arg1 : i32, i32
  }
  func.func @transform_1(%arg0: i32, %arg1: i32) -> (i32, i32) {
    %c0_i32 = arith.constant 0 : i32
    return %arg0, %arg1 : i32, i32
  }
  func.func @transform_2(%arg0: i32, %arg1: i32) -> (i32, i32) {
    %c0_i32 = arith.constant 0 : i32
    %c0_i32_0 = arith.constant 0 : i32
    return %arg0, %c0_i32 : i32, i32
  }
  func.func @transform_3(%arg0: i32, %arg1: i32) -> (i32, i32) {
    %c0_i32 = arith.constant 0 : i32
    %c0_i32_0 = arith.constant 0 : i32
    return %arg0, %c0_i32 : i32, i32
  }
}

</mosaic_0001>

<bundles_post_ra>
// kernel: tpu_custom_call.1
= control target key start
LH: loop header
LB: loop body
LE: loop exit
PB: predicated region body
PF: predicated region fallthrough
CT: control target
= control target key end

     0   :  { %9 = vsyncpa [#allocation3], 0  ;;  %s185_s0 = inlined_call_operand.hbm [shape: f32[8,256], index: 0, kind: input, shape index: {}]   ;;  %s186_s1 = inlined_call_operand.hbm [shape: f32[8,256], index: 1, kind: input, shape index: {}]   ;;  %s187_s2 = inlined_call_operand.vmem [shape: f32[8,1], index: 2, kind: output, shape index: {0}]   ;;  %s188_s3 = inlined_call_operand.vmem [shape: f32[8,1], index: 3, kind: output, shape index: {1}]  }
   0x1   :  { %10 = vsyncpa [#allocation5], 0  ;;  %s134_s12 = smov [#allocation2]   ;;  %s135_s14 = smov [#allocation4]  }
   0x2   :  { %s17_s13 = sshll.u32 %s134_s12, 4  ;;  %s27_s15 = sshll.u32 %s135_s14, 4  ;;  %s18_s13 = int_to_ptr.vmem [resolvable:$true] %s17_s13  ;;  %s28_s15 = int_to_ptr.vmem [resolvable:$true] %s27_s15 }
   0x3   :  { %s98_s16 = scalar_lea.vmem %s18_s13, 256  ;;  %p103_p1 = scmp.lt.s32.totalorder %s18_s13, %s18_s13 }
   0x4   :  { %p99_p0 = scmp.ne.s32.totalorder %s18_s13, %s98_s16  ;;  %p104_p2 = scmp.lt.s32.totalorder %s98_s16, %s98_s16 }
   0x6   :  { %p105_p3 = por %p104_p2, %p103_p1 }
   0x8   :  { %p106_p4 = pnand %p105_p3, %p99_p0 }
   0xa   :  { %109 = shalt.err (!%p106_p4)
}
   0xb   :  { %20 = dma.hbm_to_vmem [thread:$0]  %s185_s0, 256, %s18_s13, [#allocation3]  }
   0xc   :  { %s118_s19 = scalar_lea.vmem %s28_s15, 256  ;;  %p123_p6 = scmp.lt.s32.totalorder %s28_s15, %s28_s15 }
   0xd   :  { %p119_p5 = scmp.ne.s32.totalorder %s28_s15, %s118_s19  ;;  %p124_p7 = scmp.lt.s32.totalorder %s118_s19, %s118_s19 }
   0xf   :  { %p125_p8 = por %p124_p7, %p123_p6 }
  0x11   :  { %p126_p9 = pnand %p125_p8, %p119_p5 }
  0x13   :  { %129 = shalt.err (!%p126_p9)
}
  0x14   :  { %30 = dma.hbm_to_vmem [thread:$0]  %s186_s1, 256, %s28_s15, [#allocation5]  }
  0x15   :  { %130 = dma.done.wait [#allocation3], 256  }
  0x16   :  { %131 = vsyncadd [#allocation3], 4294967040 }
  0x17   :  { %132 = dma.done.wait [#allocation5], 256  }
  0x18   :  { %133 = vsyncadd [#allocation5], 4294967040  ;;  %vm41_vm0 = vcmask 7168   ;;  %v136_v0 = vmov 0.0   ;;  %v44_v1 = vld [vmem:[#allocation2] sm:$0xff]  ;;  %v45_v2 = vld [vmem:[#allocation2 + $0x8] sm:$0xff] }
  0x19   :  { %42 = vst.msk [vmem:[%s187_s2] sm:$0xff] %vm41_vm0, %v136_v0  ;;  %43 = vst.msk [vmem:[%s188_s3] sm:$0xff] %vm41_vm0, %v136_v0  ;;  %v48_v3 = vmul.f32 0.5, %v44_v1  ;;  %v49_v4 = vmul.f32 0.5, %v45_v2  ;;  %v46_v8 = vld [vmem:[#allocation4] sm:$0xff]  ;;  %v47_v10 = vld [vmem:[#allocation4 + $0x8] sm:$0xff] }
  0x1b   :  { %86 = vtanh.f32 %v48_v3 }
  0x1c   :  { %88 = vtanh.f32 %v49_v4 }
  0x20   :  { %v60_v19 = vld [vmem:[%s187_s2] sm:$0xff] }
  0x21   :  { %v67_v22 = vld [vmem:[%s188_s3] sm:$0xff] }
  0x28   :  { %v87_v5 = vpop.eup %86 }
  0x29   :  { %v89_v6 = vpop.eup %88  ;;  %v52_v7 = vmul.f32 0.5, %v87_v5 }
  0x2a   :  { %v53_v9 = vmul.f32 0.5, %v89_v6 }
  0x2b   :  { %v54_v11 = vadd.f32 0.5, %v52_v7 }
  0x2c   :  { %v55_v12 = vadd.f32 0.5, %v53_v9 }
  0x2d   :  { %v56_v13 = vmul.f32 %v54_v11, %v46_v8  ;;  %v58_v15 = vadd.f32 %v54_v11, %v46_v8 }
  0x2e   :  { %v57_v14 = vmul.f32 %v55_v12, %v47_v10  ;;  %v59_v16 = vadd.f32 %v55_v12, %v47_v10 }
  0x30   :  { %v61_v17 = vadd.f32 %v57_v14, %v56_v13  ;;  %v68_v18 = vadd.f32 %v59_v16, %v58_v15 }
  0x32   :  { %62 = vadd.xlane.f32.xlu0 %v61_v17 }
  0x36   :  { %69 = vadd.xlane.f32.xlu0 %v68_v18 }
  0xbb   :  { %v63_v20 = vpop.xlane.xlu0 %62 }
  0xbc   :  { %v64_v21 = vadd.f32 %v63_v20, %v60_v19 }
  0xbe   :  { %66 = vst.msk [vmem:[%s187_s2] sm:$0xff] %vm41_vm0, %v64_v21 }
  0xbf   :  { %v70_v23 = vpop.xlane.xlu0 %69 }
  0xc0   :  { %v71_v24 = vadd.f32 %v70_v23, %v67_v22 }
  0xc2   :  { %72 = vst.msk [vmem:[%s188_s3] sm:$0xff] %vm41_vm0, %v71_v24 }
  0xc3   :  { %81 = vsyncpa [#allocation3], 1 }
  0xc4   :  { %82 = vsyncpa [#allocation5], 1 }

</bundles_post_ra>
